<compile_context>
chip_gen: v5e
topology: v5e:2x2
jax: 0.10.0
libtpu: 0.0.40
codegen_flags: <defaults>
</compile_context>

<pallas_src>
import functools

import jax
import jax.numpy as jnp
from jax.experimental import pallas as pl
from jax.experimental.pallas import tpu as pltpu


def _build_positional_encodings(seq_len: int, d_model: int) -> jnp.ndarray:
    """Deterministic sinusoidal table, exactly mirroring the PyTorch __init__."""
    token_positions = jnp.arange(seq_len, dtype=jnp.float32).reshape(-1, 1)
    dim_positions = jnp.arange(d_model, dtype=jnp.float32).reshape(1, -1)
    angles = token_positions / 10000.0 ** (2.0 * dim_positions / d_model)
    enc = jnp.zeros((seq_len, d_model), dtype=jnp.float32)
    enc = enc.at[:, ::2].set(jnp.cos(angles[:, ::2]))
    enc = enc.at[:, 1::2].set(jnp.sin(angles[:, 1::2]))
    return enc.reshape(1, seq_len, d_model)


def _pos_enc_kernel(seed_ref, x_ref, pe_ref, o_ref, *,
                    p_dropout: float, apply_dropout: bool,
                    rows_total: int, tile_rows: int, lane: int):
    # Blocks: x_ref/o_ref (1, tile_rows, lane); pe_ref (1, tile_rows, lane), batch-invariant.
    yf = x_ref[...].astype(jnp.float32) + pe_ref[...].astype(jnp.float32)

    if apply_dropout:
        r = pl.program_id(0)   # row-tile index
        b = pl.program_id(1)   # batch index
        # Global flat element index into the original (B, S, D) tensor; makes the
        # dropout mask reproducible and independent of the chosen tiling/layout.
        base_row = (b * rows_total + r * tile_rows).astype(jnp.uint32)
        shp = yf.shape
        row_i = jax.lax.broadcasted_iota(jnp.int32, shp, 1).astype(jnp.uint32)
        lane_i = jax.lax.broadcasted_iota(jnp.int32, shp, 2).astype(jnp.uint32)
        gidx = (base_row + row_i) * jnp.uint32(lane) + lane_i

        # splitmix32-style hash of (global index, seed) -> uniform uint32 bits.
        seed_u = seed_ref[0].astype(jnp.uint32)
        h = gidx + seed_u * jnp.uint32(0x9E3779B9)
        h = h ^ (h >> jnp.uint32(16))
        h = h * jnp.uint32(0x7FEB352D)
        h = h ^ (h >> jnp.uint32(15))
        h = h * jnp.uint32(0x846CA68B)
        h = h ^ (h >> jnp.uint32(16))

        # Inverted dropout: keep with prob (1-p) via integer threshold compare.
        thr = jnp.uint32(min(int(round(p_dropout * 4294967296.0)), 4294967295))
        inv_keep = jnp.float32(1.0 / (1.0 - p_dropout))
        yf = jnp.where(h >= thr, yf * inv_keep, jnp.float32(0.0))

    o_ref[...] = yf.astype(o_ref.dtype)


def positional_encodings_forward(
    x: jnp.ndarray,
    encodings: jnp.ndarray,
    *,
    p_dropout: float,
    training: bool,
    seed: int = 0,
) -> jnp.ndarray:
    """Forward pass: x + positional_encodings, then dropout.

    x:         (B, S, D)
    encodings: (1, S, D)
    """
    B, S, D = x.shape
    assert encodings.shape == (1, S, D)
    flat = S * D
    apply_dropout = bool(training) and float(p_dropout) > 0.0

    # --- choose a lane-dense layout ---------------------------------------
    if flat % 128 == 0:
        lane = 128
        while lane * 2 <= min(flat, 1024) and flat % (lane * 2) == 0:
            lane *= 2
        rows = flat // lane
        x_t = x.reshape(B, rows, lane)
        pe_t = encodings.reshape(1, rows, lane)
    else:
        # TODO(synk): last dim not 128-aligned -> masked (lane-sparse) stores on this path.
        lane = D
        rows = S
        x_t = x
        pe_t = encodings

    # ~1 MiB f32 blocks (double-buffered x/pe/out stays well under the default
    # scoped-VMEM limit on v5e/v6e/v7x), sublane-aligned row tiles.
    target_rows = max(8, (1 << 20) // (lane * 4))
    if rows <= target_rows:
        tile_rows = rows
    else:
        tile_rows = (target_rows // 8) * 8
    num_r = pl.cdiv(rows, tile_rows)

    seed_arr = jnp.array([seed], dtype=jnp.int32)

    kernel = functools.partial(
        _pos_enc_kernel,
        p_dropout=float(p_dropout),
        apply_dropout=apply_dropout,
        rows_total=rows,
        tile_rows=tile_rows,
        lane=lane,
    )

    out = pl.pallas_call(
        kernel,
        out_shape=jax.ShapeDtypeStruct(x_t.shape, x.dtype),
        grid_spec=pltpu.PrefetchScalarGridSpec(
            num_scalar_prefetch=1,
            # batch innermost: PE block index is constant across consecutive steps,
            # so its DMA is not re-issued per batch element.
            grid=(num_r, B),
            in_specs=[
                pl.BlockSpec((1, tile_rows, lane), lambda r, b, seed: (b, r, 0)),
                pl.BlockSpec((1, tile_rows, lane), lambda r, b, seed: (0, r, 0)),
            ],
            out_specs=pl.BlockSpec((1, tile_rows, lane), lambda r, b, seed: (b, r, 0)),
        ),
        compiler_params=pltpu.CompilerParams(
            dimension_semantics=("parallel", "parallel"),
        ),
    )(seed_arr, x_t, pe_t)

    return out.reshape(B, S, D)


if __name__ == "__main__":
    # Small shapes consistent with the module: batch=2, seq_len=8, d_model=32.
    B, S, D = 2, 8, 32
    p_dropout = 0.1

    key = jax.random.PRNGKey(0)
    x = jax.random.normal(key, (B, S, D), dtype=jnp.float32)

    encodings = _build_positional_encodings(S, D)

    # Eval-mode check (dropout is identity): compare against pure-JAX reference.
    y_eval = positional_encodings_forward(
        x, encodings, p_dropout=p_dropout, training=False
    )
    y_eval = jax.block_until_ready(y_eval)
    ref = x + encodings
    assert jnp.allclose(y_eval, ref, atol=1e-6), "eval-mode mismatch"

    # Training-mode run (dropout active, deterministic hash-based RNG).
    y_train = positional_encodings_forward(
        x, encodings, p_dropout=p_dropout, training=True, seed=42
    )
    y_train = jax.block_until_ready(y_train)
    assert y_train.shape == (B, S, D)

    # Every element must be either dropped (0) or kept-and-scaled by 1/(1-p).
    scaled = ref / (1.0 - p_dropout)
    ok = jnp.isclose(y_train, 0.0, atol=1e-6) | jnp.isclose(y_train, scaled, atol=1e-5)
    assert bool(jnp.all(ok)), "training-mode dropout values malformed"

    print("KERNEL_OK")
</pallas_src>

<mosaic_0001>
module attributes {stable_mosaic.version = 11 : i64} {
  func.func @_pos_enc_kernel(%arg0: i32, %arg1: i32, %arg2: memref<1xi32, #tpu.memory_space<smem>>, %arg3: memref<1x1x256xf32, #tpu.memory_space<vmem>>, %arg4: memref<1x1x256xf32, #tpu.memory_space<vmem>>, %arg5: memref<1x1x256xf32, #tpu.memory_space<vmem>>) attributes {dimension_semantics = [#tpu.dimension_semantics<parallel>, #tpu.dimension_semantics<parallel>], iteration_bounds = array<i64: 1, 2>, scalar_prefetch = 1 : i64, scratch_operands = 0 : i64, tpu.core_type = #tpu.core_type<tc>, window_params = [{transform_indices = @transform_0, window_bounds = array<i64: 1, 1, 256>}, {transform_indices = @transform_1, window_bounds = array<i64: 1, 1, 256>}, {transform_indices = @transform_2, window_bounds = array<i64: 1, 1, 256>}]} {
    %c0 = arith.constant 0 : index
    %c0_0 = arith.constant 0 : index
    %c0_1 = arith.constant 0 : index
    %0 = vector.load %arg3[%c0, %c0_0, %c0_1] : memref<1x1x256xf32, #tpu.memory_space<vmem>>, vector<1x1x256xf32>
    %c0_2 = arith.constant 0 : index
    %c0_3 = arith.constant 0 : index
    %c0_4 = arith.constant 0 : index
    %1 = vector.load %arg4[%c0_2, %c0_3, %c0_4] : memref<1x1x256xf32, #tpu.memory_space<vmem>>, vector<1x1x256xf32>
    %2 = arith.addf %0, %1 : vector<1x1x256xf32>
    %c0_5 = arith.constant 0 : index
    %c0_6 = arith.constant 0 : index
    %c0_7 = arith.constant 0 : index
    %3 = vector.load %arg5[%c0_5, %c0_6, %c0_7] : memref<1x1x256xf32, #tpu.memory_space<vmem>>, vector<1x1x256xf32>
    tpu.vector_store %arg5[%c0_5, %c0_6, %c0_7], %2 {strides = array<i32>} : memref<1x1x256xf32, #tpu.memory_space<vmem>>, vector<1x1x256xf32>,
    return
  }
  func.func @transform_0(%arg0: i32, %arg1: i32, %arg2: memref<1xi32, #tpu.memory_space<smem>>) -> (i32, i32, i32) {
    %c0_i32 = arith.constant 0 : i32
    %c0_i32_0 = arith.constant 0 : i32
    return %arg1, %arg0, %c0_i32 : i32, i32, i32
  }
  func.func @transform_1(%arg0: i32, %arg1: i32, %arg2: memref<1xi32, #tpu.memory_space<smem>>) -> (i32, i32, i32) {
    %c0_i32 = arith.constant 0 : i32
    %c0_i32_0 = arith.constant 0 : i32
    %c0_i32_1 = arith.constant 0 : i32
    return %c0_i32, %arg0, %c0_i32_0 : i32, i32, i32
  }
  func.func @transform_2(%arg0: i32, %arg1: i32, %arg2: memref<1xi32, #tpu.memory_space<smem>>) -> (i32, i32, i32) {
    %c0_i32 = arith.constant 0 : i32
    %c0_i32_0 = arith.constant 0 : i32
    return %arg1, %arg0, %c0_i32 : i32, i32, i32
  }
}

</mosaic_0001>

<bundles_post_ra>
// kernel: tpu_custom_call.1
= control target key start
LH: loop header
LB: loop body
LE: loop exit
PB: predicated region body
PF: predicated region fallthrough
CT: control target
= control target key end

     0   :  { %9 = vsyncpa [#allocation5], 0  ;;  %s654_s0 = inlined_call_operand.<no memory space> [shape: s32[1], index: 0, kind: input, shape index: {}]   ;;  %s655_s1 = inlined_call_operand.hbm [shape: f32[2,1,256], index: 1, kind: input, shape index: {}]   ;;  %s656_s2 = inlined_call_operand.vmem [shape: f32[1,1,256], index: 2, kind: input, shape index: {}]   ;;  %s657_s3 = inlined_call_operand.hbm [shape: f32[2,1,256], index: 3, kind: output, shape index: {}]  }
   0x1   :  { %11 = vsyncpa [#allocation5 + $0x1], 0 }
   0x2   :  { %12 = vsyncpa [#allocation6], 0 }
   0x3   :  { %14 = vsyncpa [#allocation6 + $0x1], 0  ;;  %s531_s12 = smov 0   ;;  %s533_s13 = smov 0  }
   0x4   :  { %s535_s14 = smov 0   ;;  %s537_s0 = smov 0  }
   0x5   :  { %s539_s15 = smov 0   ;;  %s541_s16 = smov 0  }
   0x6 LB: > { %s321_s17 = sadd.s32 4294967295, %s509_s16   ;;  %s322_s18 = sadd.s32 4294967294, %s509_s16   ;;  %s509_s16 = sphi %s541_s16, %s20_s16   ;;  %s505_s15 = sphi %s539_s15, %s666_s15   ;;  %s501_s0 = sphi %s537_s0, %s665_s0   ;;  %s497_s14 = sphi %s535_s14, %s664_s14   ;;  %s493_s13 = sphi %s533_s13, %s663_s13   ;;  %s489_s12 = sphi %s531_s12, %s662_s12  }
   0x7   : > { %s29_s19 = sadd.s32 1, %s505_s15  ;;  %s41_s20 = sadd.s32 1, %s497_s14 }
   0x8   : > { %p30_p0 = scmp.ge.s32.totalorder %s29_s19, 2  ;;  %p48_p1 = scmp.ne.s32.totalorder %s497_s14, %s493_s13 }
   0x9   : > { %p49_p2 = scmp.eq.s32.totalorder %s509_s16, 0  ;;  %p54_p3 = scmp.ne.s32.totalorder %s493_s13, %s489_s12 }
   0xa   : > { %s668_s19 = smov (%p30_p0, %s29_s19), 0  ;;  %p55_p5 = scmp.eq.s32.totalorder %s321_s17, 0 }
   0xb   : > { %p572_p4 = por %p49_p2, %p48_p1  ;;  %s36_s22 = ssub.s32 %s505_s15, %s668_s19 }
   0xc   : > { %p106_p6 = scmp.eq.s32.totalorder %s321_s17, 1  ;;  %p39_p7 = scmp.eq.s32.totalorder %s36_s22, 0 }
   0xd   : > { %p578_p8 = por %p55_p5, %p54_p3  ;;  %p112_p10 = scmp.eq.s32.totalorder %s322_s18, 1 }
   0xe   : > { %p582_p9 = por %p106_p6, %p48_p1  ;;  %p325_p12 = scmp.ge.s32.totalorder %s509_s16, 2 }
   0xf   : > { %s587_s25 = scalar_select %p39_p7, %s497_s14, %s41_s20  }
  0x10   : > { %p589_p11 = por %p112_p10, %p54_p3  ;;  %p347_p13 = scmp.lt.s32.totalorder %s509_s16, 2 }
  0x11   : > { %s139_s27 = sand.u32 1, %s497_s14   ;;  %s327_s29 = sshll.u32 %s505_s15, 1 }
  0x12   : > { %s326_s28 = sshll.u32 %s139_s27, 1  ;;  %s149_s5 = scalar_lea.hbm %s655_s1, %s327_s29 }
  0x13   : > { %s143_s6 = scalar_lea.vmem [#allocation4], %s326_s28  ;;  %s151_s8 = sshll.u32 %s149_s5, 4  ;;  %s152_s8 = int_to_ptr.hbm [resolvable:$true] %s151_s8 }
  0x14   : > { %s153_s7 = sshll.u32 %s143_s6, 4  ;;  %p340_p0 = pnand %p347_p13, %p572_p4  ;;  %s154_s7 = int_to_ptr.vmem [resolvable:$true] %s153_s7 }
  0x15   : > { %p328_p1 = scmp.ge.s32.totalorder %s509_s16, 1  ;;  %p158_p2 = scmp.lt.s32.totalorder %s509_s16, 3 }
  0x16   : > { %s140_s9 = scalar_lea.sflag [#allocation5], %s139_s27 }
  0x17   : > { %342 = dma.hbm_to_vmem [thread:$0]  (!%p340_p0), %s152_s8, 32, %s154_s7, %s140_s9  }
  0x18   : > { %p159_p3 = pnand %p328_p1, %p158_p2 }
  0x19   : > { %s605_s10 = sand.u32 (!%p159_p3), 1, %s493_s13  }
  0x1a   : > { %162 = sbr.rel (%p159_p3) target bundleno = 47 (0x2f), region = 28  ;;  %s329_s11 = sshll.u32 (!%p159_p3), %s605_s10, 1 }
  0x1b   : > { %s165_s17 = scalar_lea.sflag (!%p159_p3), [#allocation5], %s605_s10  ;;  %s168_s18 = scalar_lea.vmem (!%p159_p3), [#allocation4], %s329_s11 }
  0x1f   : > { %480 = dma.done.wait (%p578_p8), %s165_s17, 32  }
  0x20   : > { %482 = vsyncadd (%p578_p8), %s165_s17, 4294967264  ;;  %s332_s20 = sshll.u32 %s501_s0, 1  ;;  %v201_v0 = vlaneseq  ;;  %s193_s28 = scalar_lea.vmem [#allocation7], %s329_s11  ;;  %v198_v1 = vld [vmem:[%s168_s18] sm:$0x3] }
  0x21   : > { %s219_s27 = scalar_lea.hbm %s657_s3, %s332_s20  ;;  %s221_s29 = sshll.u32 %s193_s28, 4  ;;  %v199_v2 = vld [vmem:[%s656_s2] sm:$0x3]  ;;  %s222_s29 = int_to_ptr.vmem [resolvable:$true] %s221_s29 }
  0x22   : > { %s223_s30 = sshll.u32 %s219_s27, 4  ;;  %vm203_vm0 = vcmp.lt.s32.totalorder %v201_v0, 256  ;;  %v200_v3 = vadd.f32 %v199_v2, %v198_v1  ;;  %s207_s0 = scalar_lea.sflag [#allocation6], %s605_s10  ;;  %s224_s30 = int_to_ptr.hbm [resolvable:$true] %s223_s30 }
  0x23   : > { %s441_s23 = sshra.s32 %s224_s30, 4  ;;  %s447_s9 = scalar_lea.hbm %s657_s3, 4  ;;  %s442_s23 = int_to_ptr.hbm [resolvable:$true] %s441_s23 }
  0x24   : > { %205 = vst.msk [vmem:[%s193_s28] sm:$0x3] %vm203_vm0, %v200_v3  ;;  %s443_s6 = scalar_lea.hbm %s442_s23, 2  ;;  %p448_p7 = scmp.lt.s32.totalorder %s442_s23, %s657_s3 }
  0x25   : > { %p444_p4 = scmp.ne.s32.totalorder %s442_s23, %s443_s6  ;;  %p449_p8 = scmp.lt.s32.totalorder %s447_s9, %s443_s6 }
  0x27   : > { %p445_p5 = pnand %p444_p4, %p582_p9  ;;  %p450_p10 = por %p449_p8, %p448_p7 }
  0x29   : > { %p446_p6 = pneg %p445_p5 }
  0x2b   : > { %p451_p13 = pnand %p450_p10, %p446_p6 }
  0x2d   : > { %454 = shalt.err (!%p451_p13)
}
  0x2e   : > { %337 = dma.vmem_to_hbm [thread:$0]  (%p582_p9), %s222_s29, 32, %s224_s30, %s207_s0  }
  0x2f PF: > { %s235_s10 = sand.u32 1, %s489_s12   ;;  %p344_p0 = pnand %p325_p12, %p589_p11 }
  0x30   : > { %s236_s18 = scalar_lea.sflag [#allocation6], %s235_s10 }
  0x31   : > { %p345_p1 = pneg %p344_p0 }
  0x33   : > { %484 = dma.done.wait (%p345_p1), %s236_s18, 32  }
  0x34   : > { %486 = vsyncadd (%p345_p1), %s236_s18, 4294967264  ;;  %s20_s16 = sadd.s32 1, %s509_s16   ;;  %s662_s12 = smov %s493_s13 }
  0x35   : > { %p17_p2 = scmp.ge.s32.totalorder %s20_s16, 4   ;;  %s663_s13 = smov %s497_s14 }
  0x36   : > { %s664_s14 = smov %s587_s25  ;;  %s665_s0 = smov %s505_s15 }
  0x37   : > { %s666_s15 = smov %s668_s19  ;;  %19 = sbr.rel (!%p17_p2) target bundleno = 6 (0x6), region = 76 }
  0x3c   :  { %242 = vsyncpa [#allocation5], 1 }
  0x3d   :  { %244 = vsyncpa [#allocation5 + $0x1], 1 }
  0x3e   :  { %245 = vsyncpa [#allocation6], 1 }
  0x3f   :  { %247 = vsyncpa [#allocation6 + $0x1], 1 }

</bundles_post_ra>
